<compile_context>
chip_gen: v5e
topology: v5e:2x2
jax: 0.10.0
libtpu: 0.0.40
codegen_flags: <defaults>
</compile_context>

<pallas_src>
import functools

import jax
import jax.numpy as jnp
from jax.experimental import pallas as pl
from jax.experimental.pallas import tpu as pltpu


def _round_up(x, m):
    return ((x + m - 1) // m) * m


def _qnetwork_kernel(x_ref, w1_ref, b1_ref, w2_ref, b2_ref, w3_ref, b3_ref, o_ref):
    """Fused fc1 -> relu -> fc2 -> relu -> fc3 for one batch tile."""
    x = x_ref[...]                                                      # (tb, S)   compute dtype

    h1 = jnp.dot(x, w1_ref[...], preferred_element_type=jnp.float32)   # (tb, Hp)  f32 acc
    h1 = jnp.maximum(h1 + b1_ref[...], 0.0)                            # bias + ReLU in f32

    h2 = jnp.dot(h1.astype(w2_ref.dtype), w2_ref[...],
                 preferred_element_type=jnp.float32)                   # (tb, Hp)  f32 acc
    h2 = jnp.maximum(h2 + b2_ref[...], 0.0)

    out = jnp.dot(h2.astype(w3_ref.dtype), w3_ref[...],
                  preferred_element_type=jnp.float32)                  # (tb, Ap)  f32 acc
    o_ref[...] = (out + b3_ref[...]).astype(o_ref.dtype)


@functools.partial(jax.jit, static_argnames=("block_b", "compute_dtype"))
def qnetwork_forward(state, params, *, block_b=1024, compute_dtype=jnp.bfloat16):
    """Forward pass of QNetwork.

    state:  (B, state_size) float32
    params: dict with w1 (S,H), b1 (1,H), w2 (H,H), b2 (1,H), w3 (H,A), b3 (1,A)
            (weights stored transposed relative to PyTorch: (in, out))
    returns (B, action_size) float32
    """
    w1, b1 = params["w1"], params["b1"]
    w2, b2 = params["w2"], params["b2"]
    w3, b3 = params["w3"], params["b3"]

    B, S = state.shape
    H = w1.shape[1]
    A = w3.shape[1]

    # Lane-pad hidden and action dims to 128 (dense vregs / unmasked stores).
    Hp = _round_up(H, 128)
    Ap = _round_up(A, 128)

    # Batch tile: large, 128-aligned (also satisfies bf16 sublane packing), but
    # never bigger than the (128-rounded) batch itself.
    tile_b = _round_up(min(block_b, _round_up(B, 128)), 128)
    num_tiles = pl.cdiv(B, tile_b)
    Bp = num_tiles * tile_b
    grid = (num_tiles,)

    # Zero-padding is mathematically inert: padded hidden units get zero weight
    # and zero bias (ReLU(0) = 0); padded action columns are sliced off below.
    w1p = jnp.pad(w1, ((0, 0), (0, Hp - H))).astype(compute_dtype)
    b1p = jnp.pad(b1, ((0, 0), (0, Hp - H))).astype(jnp.float32)
    w2p = jnp.pad(w2, ((0, Hp - H), (0, Hp - H))).astype(compute_dtype)
    b2p = jnp.pad(b2, ((0, 0), (0, Hp - H))).astype(jnp.float32)
    w3p = jnp.pad(w3, ((0, Hp - H), (0, Ap - A))).astype(compute_dtype)
    b3p = jnp.pad(b3, ((0, 0), (0, Ap - A))).astype(jnp.float32)

    xp = jnp.pad(state, ((0, Bp - B), (0, 0))).astype(compute_dtype)

    # Weights/biases: full arrays, constant block index across the grid.
    full = lambda shape: pl.BlockSpec(shape, lambda i: (0,) * len(shape))

    out = pl.pallas_call(
        _qnetwork_kernel,
        out_shape=jax.ShapeDtypeStruct((Bp, Ap), jnp.float32),
        grid=grid,
        in_specs=[
            pl.BlockSpec((tile_b, S), lambda i: (i, 0)),   # state tile (per grid step)
            full((S, Hp)), full((1, Hp)),                  # fc1
            full((Hp, Hp)), full((1, Hp)),                 # fc2
            full((Hp, Ap)), full((1, Ap)),                 # fc3
        ],
        out_specs=pl.BlockSpec((tile_b, Ap), lambda i: (i, 0)),
        compiler_params=pltpu.CompilerParams(
            dimension_semantics=("parallel",),             # shards tiles across TCs on v7x
        ),
    )(xp, w1p, b1p, w2p, b2p, w3p, b3p)

    return out[:B, :A]


def init_qnetwork_params(key, state_size, action_size, hidden_layer_width=64):
    """Deterministic init matching PyTorch nn.Linear default:
    weight, bias ~ U(-1/sqrt(fan_in), 1/sqrt(fan_in)).
    Weights are stored transposed: (in_features, out_features)."""
    dims = [
        (state_size, hidden_layer_width),
        (hidden_layer_width, hidden_layer_width),
        (hidden_layer_width, action_size),
    ]
    params = {}
    keys = jax.random.split(key, 2 * len(dims))
    for idx, (fan_in, fan_out) in enumerate(dims):
        bound = 1.0 / jnp.sqrt(jnp.float32(fan_in))
        w = jax.random.uniform(
            keys[2 * idx], (fan_in, fan_out), jnp.float32, -bound, bound
        )
        b = jax.random.uniform(
            keys[2 * idx + 1], (1, fan_out), jnp.float32, -bound, bound
        )
        params[f"w{idx + 1}"] = w
        params[f"b{idx + 1}"] = b
    return params


def _reference_forward(state, params):
    """Plain-JAX f32 reference for correctness checking."""
    h1 = jnp.maximum(state @ params["w1"] + params["b1"], 0.0)
    h2 = jnp.maximum(h1 @ params["w2"] + params["b2"], 0.0)
    return h2 @ params["w3"] + params["b3"]


if __name__ == "__main__":
    # Small shapes consistent with the module: state_size=8, action_size=4,
    # hidden_layer_width=64.
    state_size, action_size, hidden = 8, 4, 64

    key = jax.random.PRNGKey(0)
    pkey, xkey, ykey = jax.random.split(key, 3)

    params = init_qnetwork_params(pkey, state_size, action_size, hidden)

    # Primary check: batch=8, bf16 compute with f32 accumulation (default path).
    state = jax.random.normal(xkey, (8, state_size), jnp.float32)
    out = jax.block_until_ready(qnetwork_forward(state, params))
    ref = _reference_forward(state, params)
    assert out.shape == (8, action_size)
    assert out.dtype == jnp.float32
    assert jnp.allclose(out, ref, atol=3e-2, rtol=3e-2), "bf16 path mismatch vs reference"

    # Exactness check: f32 compute, batch not a multiple of the tile
    # (exercises the cdiv + zero-pad + slice path).
    state2 = jax.random.normal(ykey, (50, state_size), jnp.float32)
    out2 = jax.block_until_ready(
        qnetwork_forward(state2, params, compute_dtype=jnp.float32)
    )
    ref2 = _reference_forward(state2, params)
    assert out2.shape == (50, action_size)
    assert jnp.allclose(out2, ref2, atol=1e-5, rtol=1e-5), "f32 path mismatch vs reference"

    print("KERNEL_OK")
</pallas_src>

<mosaic_0001>
module attributes {stable_mosaic.version = 11 : i64} {
  func.func @_qnetwork_kernel(%arg0: i32, %arg1: memref<128x8xbf16, #tpu.memory_space<vmem>>, %arg2: memref<8x128xbf16, #tpu.memory_space<vmem>>, %arg3: memref<1x128xf32, #tpu.memory_space<vmem>>, %arg4: memref<128x128xbf16, #tpu.memory_space<vmem>>, %arg5: memref<1x128xf32, #tpu.memory_space<vmem>>, %arg6: memref<128x128xbf16, #tpu.memory_space<vmem>>, %arg7: memref<1x128xf32, #tpu.memory_space<vmem>>, %arg8: memref<128x128xf32, #tpu.memory_space<vmem>>) attributes {dimension_semantics = [#tpu.dimension_semantics<parallel>], iteration_bounds = array<i64: 1>, scalar_prefetch = 0 : i64, scratch_operands = 0 : i64, tpu.core_type = #tpu.core_type<tc>, window_params = [{transform_indices = @transform_0, window_bounds = array<i64: 128, 8>}, {pipeline_mode = #tpu.pipeline_mode<synchronous>, transform_indices = @transform_1, window_bounds = array<i64: 8, 128>}, {pipeline_mode = #tpu.pipeline_mode<synchronous>, transform_indices = @transform_2, window_bounds = array<i64: 1, 128>}, {pipeline_mode = #tpu.pipeline_mode<synchronous>, transform_indices = @transform_3, window_bounds = array<i64: 128, 128>}, {pipeline_mode = #tpu.pipeline_mode<synchronous>, transform_indices = @transform_4, window_bounds = array<i64: 1, 128>}, {pipeline_mode = #tpu.pipeline_mode<synchronous>, transform_indices = @transform_5, window_bounds = array<i64: 128, 128>}, {pipeline_mode = #tpu.pipeline_mode<synchronous>, transform_indices = @transform_6, window_bounds = array<i64: 1, 128>}, {transform_indices = @transform_7, window_bounds = array<i64: 128, 128>}]} {
    %c0 = arith.constant 0 : index
    %c0_0 = arith.constant 0 : index
    %0 = vector.load %arg1[%c0, %c0_0] : memref<128x8xbf16, #tpu.memory_space<vmem>>, vector<128x8xbf16>
    %c0_1 = arith.constant 0 : index
    %c0_2 = arith.constant 0 : index
    %1 = vector.load %arg2[%c0_1, %c0_2] : memref<8x128xbf16, #tpu.memory_space<vmem>>, vector<8x128xbf16>
    %cst = arith.constant dense<0.000000e+00> : vector<128x128xf32>
    %2 = tpu.matmul %0, %1, %cst {dimension_numbers = #tpu.dot_dimension_numbers<[1], [0], [0], [1], [0, 0, 1, 1], [], []>} : vector<128x8xbf16>, vector<8x128xbf16>, vector<128x128xf32> -> vector<128x128xf32>
    %c0_3 = arith.constant 0 : index
    %c0_4 = arith.constant 0 : index
    %3 = vector.load %arg3[%c0_3, %c0_4] : memref<1x128xf32, #tpu.memory_space<vmem>>, vector<1x128xf32>
    %4 = vector.broadcast %3 : vector<1x128xf32> to vector<128x128xf32>
    %5 = arith.addf %2, %4 : vector<128x128xf32>
    %cst_5 = arith.constant 0.000000e+00 : f32
    %6 = vector.broadcast %cst_5 : f32 to vector<128x128xf32>
    %7 = arith.maximumf %5, %6 : vector<128x128xf32>
    %8 = arith.truncf %7 : vector<128x128xf32> to vector<128x128xbf16>
    %c0_6 = arith.constant 0 : index
    %c0_7 = arith.constant 0 : index
    %9 = vector.load %arg4[%c0_6, %c0_7] : memref<128x128xbf16, #tpu.memory_space<vmem>>, vector<128x128xbf16>
    %cst_8 = arith.constant dense<0.000000e+00> : vector<128x128xf32>
    %10 = tpu.matmul %8, %9, %cst_8 {dimension_numbers = #tpu.dot_dimension_numbers<[1], [0], [0], [1], [0, 0, 1, 1], [], []>} : vector<128x128xbf16>, vector<128x128xbf16>, vector<128x128xf32> -> vector<128x128xf32>
    %c0_9 = arith.constant 0 : index
    %c0_10 = arith.constant 0 : index
    %11 = vector.load %arg5[%c0_9, %c0_10] : memref<1x128xf32, #tpu.memory_space<vmem>>, vector<1x128xf32>
    %12 = vector.broadcast %11 : vector<1x128xf32> to vector<128x128xf32>
    %13 = arith.addf %10, %12 : vector<128x128xf32>
    %cst_11 = arith.constant 0.000000e+00 : f32
    %14 = vector.broadcast %cst_11 : f32 to vector<128x128xf32>
    %15 = arith.maximumf %13, %14 : vector<128x128xf32>
    %16 = arith.truncf %15 : vector<128x128xf32> to vector<128x128xbf16>
    %c0_12 = arith.constant 0 : index
    %c0_13 = arith.constant 0 : index
    %17 = vector.load %arg6[%c0_12, %c0_13] : memref<128x128xbf16, #tpu.memory_space<vmem>>, vector<128x128xbf16>
    %cst_14 = arith.constant dense<0.000000e+00> : vector<128x128xf32>
    %18 = tpu.matmul %16, %17, %cst_14 {dimension_numbers = #tpu.dot_dimension_numbers<[1], [0], [0], [1], [0, 0, 1, 1], [], []>} : vector<128x128xbf16>, vector<128x128xbf16>, vector<128x128xf32> -> vector<128x128xf32>
    %c0_15 = arith.constant 0 : index
    %c0_16 = arith.constant 0 : index
    %19 = vector.load %arg7[%c0_15, %c0_16] : memref<1x128xf32, #tpu.memory_space<vmem>>, vector<1x128xf32>
    %20 = vector.broadcast %19 : vector<1x128xf32> to vector<128x128xf32>
    %21 = arith.addf %18, %20 : vector<128x128xf32>
    %c0_17 = arith.constant 0 : index
    %c0_18 = arith.constant 0 : index
    %22 = vector.load %arg8[%c0_17, %c0_18] : memref<128x128xf32, #tpu.memory_space<vmem>>, vector<128x128xf32>
    tpu.vector_store %arg8[%c0_17, %c0_18], %21 {strides = array<i32>} : memref<128x128xf32, #tpu.memory_space<vmem>>, vector<128x128xf32>,
    return
  }
  func.func @transform_0(%arg0: i32) -> (i32, i32) {
    %c0_i32 = arith.constant 0 : i32
    %c0_i32_0 = arith.constant 0 : i32
    return %arg0, %c0_i32 : i32, i32
  }
  func.func @transform_1(%arg0: i32) -> (i32, i32) {
    %c0_i32 = arith.constant 0 : i32
    %c0_i32_0 = arith.constant 0 : i32
    %c0_i32_1 = arith.constant 0 : i32
    return %c0_i32, %c0_i32_0 : i32, i32
  }
  func.func @transform_2(%arg0: i32) -> (i32, i32) {
    %c0_i32 = arith.constant 0 : i32
    %c0_i32_0 = arith.constant 0 : i32
    %c0_i32_1 = arith.constant 0 : i32
    return %c0_i32, %c0_i32_0 : i32, i32
  }
  func.func @transform_3(%arg0: i32) -> (i32, i32) {
    %c0_i32 = arith.constant 0 : i32
    %c0_i32_0 = arith.constant 0 : i32
    %c0_i32_1 = arith.constant 0 : i32
    return %c0_i32, %c0_i32_0 : i32, i32
  }
  func.func @transform_4(%arg0: i32) -> (i32, i32) {
    %c0_i32 = arith.constant 0 : i32
    %c0_i32_0 = arith.constant 0 : i32
    %c0_i32_1 = arith.constant 0 : i32
    return %c0_i32, %c0_i32_0 : i32, i32
  }
  func.func @transform_5(%arg0: i32) -> (i32, i32) {
    %c0_i32 = arith.constant 0 : i32
    %c0_i32_0 = arith.constant 0 : i32
    %c0_i32_1 = arith.constant 0 : i32
    return %c0_i32, %c0_i32_0 : i32, i32
  }
  func.func @transform_6(%arg0: i32) -> (i32, i32) {
    %c0_i32 = arith.constant 0 : i32
    %c0_i32_0 = arith.constant 0 : i32
    %c0_i32_1 = arith.constant 0 : i32
    return %c0_i32, %c0_i32_0 : i32, i32
  }
  func.func @transform_7(%arg0: i32) -> (i32, i32) {
    %c0_i32 = arith.constant 0 : i32
    %c0_i32_0 = arith.constant 0 : i32
    return %arg0, %c0_i32 : i32, i32
  }
}

</mosaic_0001>

<bundles_post_ra>
// kernel: qnetwork_forward.1
= control target key start
LH: loop header
LB: loop body
LE: loop exit
PB: predicated region body
PF: predicated region fallthrough
CT: control target
= control target key end

     0   :  { %vm113_vm0 = vcmask 1043456   ;;  %vm88_vm1 = vcmask 64512   ;;  %s813_s1 = inlined_call_operand.vmem [shape: bf16[8,128], index: 1, kind: input, shape index: {}]   ;;  %s814_s0 = inlined_call_operand.vmem [shape: bf16[128,8], index: 0, kind: input, shape index: {}]   ;;  %s815_s2 = inlined_call_operand.vmem [shape: f32[1,128], index: 2, kind: input, shape index: {}]   ;;  %s816_s3 = inlined_call_operand.vmem [shape: bf16[128,128], index: 3, kind: input, shape index: {}]   ;;  %s817_s4 = inlined_call_operand.vmem [shape: f32[1,128], index: 4, kind: input, shape index: {}]   ;;  %s818_s5 = inlined_call_operand.vmem [shape: bf16[128,128], index: 5, kind: input, shape index: {}]   ;;  %s819_s6 = inlined_call_operand.vmem [shape: f32[1,128], index: 6, kind: input, shape index: {}]   ;;  %s820_s7 = inlined_call_operand.vmem [shape: f32[128,128], index: 7, kind: output, shape index: {}]  }
   0x1   :  { %v43_v0 = vld [vmem:[%s813_s1] sm:$0xf]  ;;  %v573_v3 = vld [vmem:[%s814_s0 + $0x8] sm:$0xff]  ;;  %v574_v4 = vld [vmem:[%s814_s0 + $0x10] sm:$0xff] }
   0x2   :  { %v115_v1 = vsel %vm113_vm0, %v43_v0, 0  ;;  %v572_v2 = vld [vmem:[%s814_s0] sm:$0xff]  ;;  %v575_v5 = vld [vmem:[%s814_s0 + $0x18] sm:$0xff]  ;;  %v577_v8 = vld [vmem:[%s814_s0 + $0x28] sm:$0xff] }
   0x3   :  { %124 = vmatpush.bf16.msra.mxu0 %v115_v1  ;;  %v576_v6 = vld [vmem:[%s814_s0 + $0x20] sm:$0xff]  ;;  %v587_v7 = vld [vmem:[%s816_s3 + $0x38] sm:$0xff]  ;;  %v586_v9 = vld [vmem:[%s816_s3 + $0x30] sm:$0xff] }
   0x4   :  { %258 = vmatpush.bf16.msra.mxu1 %v587_v7  ;;  %596 = vmatpush.bf16.msra.mxu3 %v587_v7  ;;  %v585_v10 = vld [vmem:[%s816_s3 + $0x28] sm:$0xff]  ;;  %v584_v11 = vld [vmem:[%s816_s3 + $0x20] sm:$0xff]  ;;  %v583_v12 = vld [vmem:[%s816_s3 + $0x18] sm:$0xff] }
   0x5   :  { %v578_v13 = vld [vmem:[%s814_s0 + $0x30] sm:$0xff]  ;;  %v581_v15 = vld [vmem:[%s816_s3 + $0x8] sm:$0xff]  ;;  %v580_v16 = vld [vmem:[%s816_s3] sm:$0xff] }
   0x6   :  { %500 = vmatmul.msk.bf16.vlgmr.msra.gmra.mxu0 %vm88_vm1, %v572_v2  ;;  %v582_v14 = vld [vmem:[%s816_s3 + $0x10] sm:$0xff]  ;;  %v579_v17 = vld [vmem:[%s814_s0 + $0x38] sm:$0xff]  ;;  %v717_v19 = vld [vmem:[%s815_s2] ss:$0 sm:$0xff] }
   0x7   :  { %v595_v58 = vld [vmem:[%s818_s5 + $0x38] sm:$0xff]  ;;  %v594_v62 = vld [vmem:[%s818_s5 + $0x30] sm:$0xff]  ;;  %v593_v0 = vld [vmem:[%s818_s5 + $0x28] sm:$0xff] }
   0x8   :  { %259 = vmatpush.bf16.msra.mxu1 %v586_v9  ;;  %597 = vmatpush.bf16.msra.mxu3 %v586_v9  ;;  %v592_v1 = vld [vmem:[%s818_s5 + $0x20] sm:$0xff]  ;;  %v590_v9 = vld [vmem:[%s818_s5 + $0x10] sm:$0xff] }
   0x9   :  { %399 = vmatpush.bf16.msra.mxu2 %v595_v58 }
   0xc   :  { %260 = vmatpush.bf16.msra.mxu1 %v585_v10  ;;  %598 = vmatpush.bf16.msra.mxu3 %v585_v10 }
   0xd   :  { %400 = vmatpush.bf16.msra.mxu2 %v594_v62 }
  0x10   :  { %261 = vmatpush.bf16.msra.mxu1 %v584_v11  ;;  %599 = vmatpush.bf16.msra.mxu3 %v584_v11  ;;  %v589_v11 = vld [vmem:[%s818_s5 + $0x8] sm:$0xff] }
  0x11   :  { %401 = vmatpush.bf16.msra.mxu2 %v593_v0 }
  0x14   :  { %262 = vmatpush.bf16.msra.mxu1 %v583_v12  ;;  %600 = vmatpush.bf16.msra.mxu3 %v583_v12  ;;  %v588_v12 = vld [vmem:[%s818_s5] sm:$0xff] }
  0x15   :  { %402 = vmatpush.bf16.msra.mxu2 %v592_v1 }
  0x16   :  { %501 = vmatmul.msk.bf16.gmra.mxu0 %vm88_vm1, %v573_v3 }
  0x18   :  { %263 = vmatpush.bf16.msra.mxu1 %v582_v14  ;;  %601 = vmatpush.bf16.msra.mxu3 %v582_v14 }
  0x1c   :  { %264 = vmatpush.bf16.msra.mxu1 %v581_v15  ;;  %602 = vmatpush.bf16.msra.mxu3 %v581_v15 }
  0x20   :  { %265 = vmatpush.bf16.msra.mxu1 %v580_v16  ;;  %603 = vmatpush.bf16.msra.mxu3 %v580_v16 }
  0x24   :  { %604 = vmatpush.bf16.msrb.mxu3 %v595_v58 }
  0x26   :  { %502 = vmatmul.msk.bf16.gmra.mxu0 %vm88_vm1, %v574_v4 }
  0x28   :  { %605 = vmatpush.bf16.msrb.mxu3 %v594_v62 }
  0x2c   :  { %606 = vmatpush.bf16.msrb.mxu3 %v593_v0 }
  0x30   :  { %607 = vmatpush.bf16.msrb.mxu3 %v592_v1 }
  0x36   :  { %503 = vmatmul.msk.bf16.gmra.mxu0 %vm88_vm1, %v575_v5  ;;  %v591_v5 = vld [vmem:[%s818_s5 + $0x18] sm:$0xff] }
  0x37   :  { %403 = vmatpush.bf16.msra.mxu2 %v591_v5  ;;  %608 = vmatpush.bf16.msrb.mxu3 %v591_v5 }
  0x3b   :  { %404 = vmatpush.bf16.msra.mxu2 %v590_v9  ;;  %609 = vmatpush.bf16.msrb.mxu3 %v590_v9 }
  0x3f   :  { %405 = vmatpush.bf16.msra.mxu2 %v589_v11  ;;  %610 = vmatpush.bf16.msrb.mxu3 %v589_v11 }
  0x43   :  { %406 = vmatpush.bf16.msra.mxu2 %v588_v12  ;;  %611 = vmatpush.bf16.msrb.mxu3 %v588_v12  ;;  %v614_v12 = vld [vmem:[%s819_s6] ss:$0 sm:$0xff] }
  0x46   :  { %504 = vmatmul.msk.bf16.gmra.mxu0 %vm88_vm1, %v576_v6 }
  0x56   :  { %505 = vmatmul.msk.bf16.gmra.mxu0 %vm88_vm1, %v577_v8 }
  0x66   :  { %506 = vmatmul.msk.bf16.gmra.mxu0 %vm88_vm1, %v578_v13 }
  0x76   :  { %507 = vmatmul.msk.bf16.gmra.mxu0 %vm88_vm1, %v579_v17 }
  0x83   :  { %v126_v18 = vpop.f32.mrf.mxu0 }
  0x84   :  { %v127_v20 = vadd.f32 %v717_v19, %v126_v18 }
  0x86   :  { %v166_v23 = vmax.f32 %v127_v20, 0.0 }
  0x8b   :  { %v128_v21 = vpop.f32.mrf.mxu0 }
  0x8c   :  { %v129_v22 = vadd.f32 %v717_v19, %v128_v21  ;;  %v613_v21 = vld [vmem:[%s817_s4] ss:$0 sm:$0xff] }
  0x8e   :  { %v167_v24 = vmax.f32 %v129_v22, 0.0 }
  0x90   :  { %v182_v25 = vpack.c.bf16 %v167_v24, %v166_v23 }
  0x92   :  { %266 = vmatmul.bf16.vlgmr.msra.gmra.mxu1 %v182_v25 }
  0x93   :  { %v131_v26 = vpop.f32.mrf.mxu0 }
  0x94   :  { %v132_v27 = vadd.f32 %v717_v19, %v131_v26 }
  0x96   :  { %v168_v30 = vmax.f32 %v132_v27, 0.0 }
  0x9b   :  { %v133_v28 = vpop.f32.mrf.mxu0 }
  0x9c   :  { %v134_v29 = vadd.f32 %v717_v19, %v133_v28 }
  0x9e   :  { %v169_v31 = vmax.f32 %v134_v29, 0.0 }
  0xa0   :  { %v183_v32 = vpack.c.bf16 %v169_v31, %v168_v30 }
  0xa2   :  { %271 = vmatmul.bf16.gmra.mxu1 %v183_v32 }
  0xa3   :  { %v136_v33 = vpop.f32.mrf.mxu0 }
  0xa4   :  { %v137_v34 = vadd.f32 %v717_v19, %v136_v33 }
  0xa6   :  { %v170_v37 = vmax.f32 %v137_v34, 0.0 }
  0xab   :  { %v138_v35 = vpop.f32.mrf.mxu0 }
  0xac   :  { %v139_v36 = vadd.f32 %v717_v19, %v138_v35 }
  0xae   :  { %v171_v38 = vmax.f32 %v139_v36, 0.0 }
  0xb0   :  { %v184_v39 = vpack.c.bf16 %v171_v38, %v170_v37 }
  0xb2   :  { %276 = vmatmul.bf16.gmra.mxu1 %v184_v39 }
  0xb3   :  { %v141_v40 = vpop.f32.mrf.mxu0 }
  0xb4   :  { %v142_v41 = vadd.f32 %v717_v19, %v141_v40 }
  0xb6   :  { %v172_v44 = vmax.f32 %v142_v41, 0.0 }
  0xbb   :  { %v143_v42 = vpop.f32.mrf.mxu0 }
  0xbc   :  { %v144_v43 = vadd.f32 %v717_v19, %v143_v42 }
  0xbe   :  { %v173_v45 = vmax.f32 %v144_v43, 0.0 }
  0xc0   :  { %v185_v46 = vpack.c.bf16 %v173_v45, %v172_v44 }
  0xc2   :  { %281 = vmatmul.bf16.gmra.mxu1 %v185_v46 }
  0xc3   :  { %v146_v47 = vpop.f32.mrf.mxu0 }
  0xc4   :  { %v147_v48 = vadd.f32 %v717_v19, %v146_v47 }
  0xc6   :  { %v174_v51 = vmax.f32 %v147_v48, 0.0 }
  0xcb   :  { %v148_v49 = vpop.f32.mrf.mxu0 }
  0xcc   :  { %v149_v50 = vadd.f32 %v717_v19, %v148_v49 }
  0xce   :  { %v175_v52 = vmax.f32 %v149_v50, 0.0 }
  0xd0   :  { %v186_v53 = vpack.c.bf16 %v175_v52, %v174_v51 }
  0xd2   :  { %286 = vmatmul.bf16.gmra.mxu1 %v186_v53 }
  0xd3   :  { %v151_v54 = vpop.f32.mrf.mxu0 }
  0xd4   :  { %v152_v55 = vadd.f32 %v717_v19, %v151_v54 }
  0xd6   :  { %v176_v59 = vmax.f32 %v152_v55, 0.0 }
  0xdb   :  { %v153_v56 = vpop.f32.mrf.mxu0 }
  0xdc   :  { %v154_v57 = vadd.f32 %v717_v19, %v153_v56 }
  0xde   :  { %v177_v60 = vmax.f32 %v154_v57, 0.0 }
  0xe0   :  { %v187_v61 = vpack.c.bf16 %v177_v60, %v176_v59 }
  0xe2   :  { %291 = vmatmul.bf16.gmra.mxu1 %v187_v61 }
  0xe3   :  { %v156_v63 = vpop.f32.mrf.mxu0 }
  0xe4   :  { %v157_v2 = vadd.f32 %v717_v19, %v156_v63 }
  0xe6   :  { %v178_v6 = vmax.f32 %v157_v2, 0.0 }
  0xeb   :  { %v158_v3 = vpop.f32.mrf.mxu0 }
  0xec   :  { %v159_v4 = vadd.f32 %v717_v19, %v158_v3 }
  0xee   :  { %v179_v7 = vmax.f32 %v159_v4, 0.0 }
  0xf0   :  { %v188_v8 = vpack.c.bf16 %v179_v7, %v178_v6 }
  0xf2   :  { %296 = vmatmul.bf16.vlgmr.msra.gmra.mxu3 %v188_v8 }
  0xf3   :  { %v161_v10 = vpop.f32.mrf.mxu0 }
  0xf4   :  { %v162_v13 = vadd.f32 %v717_v19, %v161_v10 }
  0xf6   :  { %v180_v16 = vmax.f32 %v162_v13, 0.0 }
  0xfb   :  { %v163_v14 = vpop.f32.mrf.mxu0 }
  0xfc   :  { %v164_v15 = vadd.f32 %v717_v19, %v163_v14 }
  0xfe   :  { %v181_v17 = vmax.f32 %v164_v15, 0.0 }
 0x100   :  { %v189_v18 = vpack.c.bf16 %v181_v17, %v180_v16 }
 0x102   :  { %301 = vmatmul.bf16.gmra.mxu3 %v189_v18 }
 0x10f   :  { %v267_v20 = vpop.f32.mrf.mxu1 }
 0x110   :  { %v268_v22 = vadd.f32 %v613_v21, %v267_v20 }
 0x112   :  { %v307_v25 = vmax.f32 %v268_v22, 0.0 }
 0x117   :  { %v269_v23 = vpop.f32.mrf.mxu1 }
 0x118   :  { %v270_v24 = vadd.f32 %v613_v21, %v269_v23 }
 0x11a   :  { %v308_v26 = vmax.f32 %v270_v24, 0.0 }
 0x11c   :  { %v323_v27 = vpack.c.bf16 %v308_v26, %v307_v25 }
 0x11e   :  { %407 = vmatmul.bf16.vlgmr.msra.gmra.mxu2 %v323_v27 }
 0x11f   :  { %v272_v28 = vpop.f32.mrf.mxu1 }
 0x120   :  { %v273_v29 = vadd.f32 %v613_v21, %v272_v28 }
 0x122   :  { %v309_v31 = vmax.f32 %v273_v29, 0.0 }
 0x127   :  { %v274_v30 = vpop.f32.mrf.mxu1 }
 0x128   :  { %v275_v19 = vadd.f32 %v613_v21, %v274_v30 }
 0x12a   :  { %v310_v32 = vmax.f32 %v275_v19, 0.0 }
 0x12c   :  { %v324_v33 = vpack.c.bf16 %v310_v32, %v309_v31 }
 0x12e   :  { %412 = vmatmul.bf16.gmra.mxu2 %v324_v33 }
 0x12f   :  { %v277_v34 = vpop.f32.mrf.mxu1 }
 0x130   :  { %v278_v35 = vadd.f32 %v613_v21, %v277_v34 }
 0x132   :  { %v311_v38 = vmax.f32 %v278_v35, 0.0 }
 0x137   :  { %v279_v36 = vpop.f32.mrf.mxu1 }
 0x138   :  { %v280_v37 = vadd.f32 %v613_v21, %v279_v36 }
 0x13a   :  { %v312_v39 = vmax.f32 %v280_v37, 0.0 }
 0x13c   :  { %v325_v40 = vpack.c.bf16 %v312_v39, %v311_v38 }
 0x13e   :  { %417 = vmatmul.bf16.gmra.mxu2 %v325_v40 }
 0x13f   :  { %v282_v41 = vpop.f32.mrf.mxu1 }
 0x140   :  { %v283_v42 = vadd.f32 %v613_v21, %v282_v41 }
 0x142   :  { %v313_v45 = vmax.f32 %v283_v42, 0.0 }
 0x147   :  { %v284_v43 = vpop.f32.mrf.mxu1 }
 0x148   :  { %v285_v44 = vadd.f32 %v613_v21, %v284_v43 }
 0x14a   :  { %v314_v46 = vmax.f32 %v285_v44, 0.0 }
 0x14c   :  { %v326_v47 = vpack.c.bf16 %v314_v46, %v313_v45 }
 0x14e   :  { %422 = vmatmul.bf16.gmra.mxu2 %v326_v47 }
 0x14f   :  { %v287_v48 = vpop.f32.mrf.mxu1 }
 0x150   :  { %v288_v49 = vadd.f32 %v613_v21, %v287_v48 }
 0x152   :  { %v315_v52 = vmax.f32 %v288_v49, 0.0 }
 0x157   :  { %v289_v50 = vpop.f32.mrf.mxu1 }
 0x158   :  { %v290_v51 = vadd.f32 %v613_v21, %v289_v50 }
 0x15a   :  { %v316_v53 = vmax.f32 %v290_v51, 0.0 }
 0x15c   :  { %v327_v54 = vpack.c.bf16 %v316_v53, %v315_v52 }
 0x15e   :  { %427 = vmatmul.bf16.gmra.mxu2 %v327_v54 }
 0x15f   :  { %v292_v55 = vpop.f32.mrf.mxu1 }
 0x160   :  { %v293_v56 = vadd.f32 %v613_v21, %v292_v55 }
 0x162   :  { %v317_v59 = vmax.f32 %v293_v56, 0.0 }
 0x167   :  { %v294_v57 = vpop.f32.mrf.mxu1 }
 0x168   :  { %v295_v58 = vadd.f32 %v613_v21, %v294_v57 }
 0x16a   :  { %v318_v60 = vmax.f32 %v295_v58, 0.0 }
 0x16c   :  { %v328_v61 = vpack.c.bf16 %v318_v60, %v317_v59 }
 0x16e   :  { %432 = vmatmul.bf16.gmra.mxu2 %v328_v61 }
 0x175   :  { %v297_v62 = vpop.f32.mrf.mxu3 }
 0x176   :  { %v298_v63 = vadd.f32 %v613_v21, %v297_v62 }
 0x178   :  { %v319_v2 = vmax.f32 %v298_v63, 0.0 }
 0x17d   :  { %v299_v0 = vpop.f32.mrf.mxu3 }
 0x17e   :  { %v300_v1 = vadd.f32 %v613_v21, %v299_v0 }
 0x180   :  { %v320_v3 = vmax.f32 %v300_v1, 0.0 }
 0x182   :  { %v329_v4 = vpack.c.bf16 %v320_v3, %v319_v2 }
 0x184   :  { %437 = vmatmul.bf16.vlgmr.msrb.gmra.mxu3 %v329_v4 }
 0x185   :  { %v302_v5 = vpop.f32.mrf.mxu3 }
 0x186   :  { %v303_v6 = vadd.f32 %v613_v21, %v302_v5 }
 0x188   :  { %v321_v9 = vmax.f32 %v303_v6, 0.0 }
 0x18d   :  { %v304_v7 = vpop.f32.mrf.mxu3 }
 0x18e   :  { %v305_v8 = vadd.f32 %v613_v21, %v304_v7 }
 0x190   :  { %v322_v10 = vmax.f32 %v305_v8, 0.0 }
 0x192   :  { %v330_v11 = vpack.c.bf16 %v322_v10, %v321_v9 }
 0x194   :  { %442 = vmatmul.bf16.gmra.mxu3 %v330_v11 }
 0x1a1   :  { %v408_v13 = vpop.f32.mrf.mxu2 }
 0x1a2   :  { %v409_v14 = vadd.f32 %v614_v12, %v408_v13 }
 0x1a4   :  { %448 = vst [vmem:[%s820_s7] sm:$0xff] %v409_v14 }
 0x1a9   :  { %v410_v15 = vpop.f32.mrf.mxu2 }
 0x1aa   :  { %v411_v16 = vadd.f32 %v614_v12, %v410_v15 }
 0x1ac   :  { %449 = vst [vmem:[%s820_s7 + $0x8] sm:$0xff] %v411_v16 }
 0x1b1   :  { %v413_v17 = vpop.f32.mrf.mxu2 }
 0x1b2   :  { %v414_v18 = vadd.f32 %v614_v12, %v413_v17 }
 0x1b4   :  { %450 = vst [vmem:[%s820_s7 + $0x10] sm:$0xff] %v414_v18 }
 0x1b9   :  { %v415_v20 = vpop.f32.mrf.mxu2 }
 0x1ba   :  { %v416_v21 = vadd.f32 %v614_v12, %v415_v20 }
 0x1bc   :  { %451 = vst [vmem:[%s820_s7 + $0x18] sm:$0xff] %v416_v21 }
 0x1c1   :  { %v418_v22 = vpop.f32.mrf.mxu2 }
 0x1c2   :  { %v419_v23 = vadd.f32 %v614_v12, %v418_v22 }
 0x1c4   :  { %452 = vst [vmem:[%s820_s7 + $0x20] sm:$0xff] %v419_v23 }
 0x1c9   :  { %v420_v24 = vpop.f32.mrf.mxu2 }
 0x1ca   :  { %v421_v25 = vadd.f32 %v614_v12, %v420_v24 }
 0x1cc   :  { %453 = vst [vmem:[%s820_s7 + $0x28] sm:$0xff] %v421_v25 }
 0x1d1   :  { %v423_v26 = vpop.f32.mrf.mxu2 }
 0x1d2   :  { %v424_v27 = vadd.f32 %v614_v12, %v423_v26 }
 0x1d4   :  { %454 = vst [vmem:[%s820_s7 + $0x30] sm:$0xff] %v424_v27 }
 0x1d9   :  { %v425_v28 = vpop.f32.mrf.mxu2 }
 0x1da   :  { %v426_v29 = vadd.f32 %v614_v12, %v425_v28 }
 0x1dc   :  { %455 = vst [vmem:[%s820_s7 + $0x38] sm:$0xff] %v426_v29 }
 0x1e1   :  { %v428_v30 = vpop.f32.mrf.mxu2 }
 0x1e2   :  { %v429_v19 = vadd.f32 %v614_v12, %v428_v30 }
 0x1e4   :  { %456 = vst [vmem:[%s820_s7 + $0x40] sm:$0xff] %v429_v19 }
 0x1e9   :  { %v430_v31 = vpop.f32.mrf.mxu2 }
 0x1ea   :  { %v431_v32 = vadd.f32 %v614_v12, %v430_v31 }
 0x1ec   :  { %457 = vst [vmem:[%s820_s7 + $0x48] sm:$0xff] %v431_v32 }
 0x1f1   :  { %v433_v33 = vpop.f32.mrf.mxu2 }
 0x1f2   :  { %v434_v34 = vadd.f32 %v614_v12, %v433_v33 }
 0x1f4   :  { %458 = vst [vmem:[%s820_s7 + $0x50] sm:$0xff] %v434_v34 }
 0x1f9   :  { %v435_v35 = vpop.f32.mrf.mxu2 }
 0x1fa   :  { %v436_v36 = vadd.f32 %v614_v12, %v435_v35 }
 0x1fc   :  { %459 = vst [vmem:[%s820_s7 + $0x58] sm:$0xff] %v436_v36 }
 0x207   :  { %v438_v37 = vpop.f32.mrf.mxu3 }
 0x208   :  { %v439_v38 = vadd.f32 %v614_v12, %v438_v37 }
 0x20a   :  { %460 = vst [vmem:[%s820_s7 + $0x60] sm:$0xff] %v439_v38 }
 0x20f   :  { %v440_v39 = vpop.f32.mrf.mxu3 }
 0x210   :  { %v441_v40 = vadd.f32 %v614_v12, %v440_v39 }
 0x212   :  { %461 = vst [vmem:[%s820_s7 + $0x68] sm:$0xff] %v441_v40 }
 0x217   :  { %v443_v41 = vpop.f32.mrf.mxu3 }
 0x218   :  { %v444_v42 = vadd.f32 %v614_v12, %v443_v41 }
 0x21a   :  { %462 = vst [vmem:[%s820_s7 + $0x70] sm:$0xff] %v444_v42 }
 0x21f   :  { %v445_v43 = vpop.f32.mrf.mxu3 }
 0x220   :  { %v446_v44 = vadd.f32 %v614_v12, %v445_v43 }
 0x222   :  { %463 = vst [vmem:[%s820_s7 + $0x78] sm:$0xff] %v446_v44 }

</bundles_post_ra>
